<compile_context>
chip_gen: v5e
topology: v5e:2x2
jax: 0.10.0
libtpu: 0.0.40
codegen_flags: <defaults>
</compile_context>

<pallas_src>
from collections import namedtuple

import jax
import jax.numpy as jnp
from jax.experimental import pallas as pl
from jax.experimental.pallas import tpu as pltpu


def _round_up(n, m):
    return ((n + m - 1) // m) * m


# ----------------------------------------------------------------------------- kernels

def _head_kernel_resident(x_ref, w1_ref, b1_ref, w2_ref, b2_ref, logits_ref, feat_ref):
    """Both weight matrices resident in VMEM; grid = (batch tiles,)."""
    h = jnp.dot(x_ref[...], w1_ref[...], preferred_element_type=jnp.float32)
    feat = jnp.maximum(h + b1_ref[...], 0.0)            # module uses ReLU (not tanh)
    # TODO(synk): nn.Dropout is identity in eval mode; training-mode stochastic
    # dropout (pltpu.prng_*) is not implemented here.
    feat_ref[...] = feat.astype(feat_ref.dtype)
    # Single cast of the f32 activations to the MXU operand dtype (no double cast).
    logits = jnp.dot(feat.astype(w2_ref.dtype), w2_ref[...],
                     preferred_element_type=jnp.float32)
    logits_ref[...] = (logits + b2_ref[...]).astype(logits_ref.dtype)


def _head_kernel_inner_tiled(x_ref, w1_ref, b1_ref, w2_ref, b2_ref,
                             logits_ref, feat_ref, acc_ref):
    """inner_dim tiled along grid axis 1; logits accumulated in a VMEM scratch."""
    j = pl.program_id(1)

    h = jnp.dot(x_ref[...], w1_ref[...], preferred_element_type=jnp.float32)
    feat = jnp.maximum(h + b1_ref[...], 0.0)
    feat_ref[...] = feat.astype(feat_ref.dtype)

    @pl.when(j == 0)
    def _():
        acc_ref[...] = jnp.zeros_like(acc_ref)

    acc_ref[...] += jnp.dot(feat.astype(w2_ref.dtype), w2_ref[...],
                            preferred_element_type=jnp.float32)

    @pl.when(j == pl.num_programs(1) - 1)
    def _():
        logits_ref[...] = (acc_ref[...] + b2_ref[...]).astype(logits_ref.dtype)


# ----------------------------------------------------------------------------- params

HeadParams = namedtuple(
    "HeadParams",
    ["w1", "b1", "w2", "b2", "input_dim", "inner_dim", "num_classes",
     "inner_pad", "ncls_pad", "block_n"])


def _choose_block_n(input_dim, inner_pad, ncls_pad, weight_itemsize, block_n):
    """Pick the inner_dim tile.  None => keep both weight matrices resident in VMEM."""
    if block_n is not None:
        block_n = _round_up(int(block_n), 128)
        return None if block_n >= inner_pad else block_n
    resident = (input_dim * inner_pad + inner_pad * ncls_pad) * weight_itemsize
    budget = 24 << 20          # keep resident weights well inside scoped VMEM (v7x: 64 MiB phys)
    if resident <= budget:
        return None
    per_col = (input_dim + ncls_pad) * weight_itemsize
    bn = max(128, (budget // per_col) // 128 * 128)
    return int(min(bn, inner_pad))


def prepare_head_params(w_dense, b_dense, w_out, b_out, *,
                        compute_dtype=jnp.bfloat16, block_n=None):
    """Pad (lane-dense 128 multiples) + cast the weights ONCE; cache across calls.

    w_dense: (input_dim, inner_dim)   -- transposed nn.Linear weight
    w_out:   (inner_dim, num_classes) -- transposed nn.Linear weight
    compute_dtype: MXU operand dtype (default bf16; None keeps the weights' dtype,
                   bit-faithful to the f32 PyTorch module).
    block_n: optional inner_dim tile (multiple of 128); None => auto.
    """
    input_dim, inner_dim = w_dense.shape
    num_classes = w_out.shape[1]

    wt_dtype = jnp.dtype(compute_dtype) if compute_dtype is not None else jnp.dtype(w_dense.dtype)
    inner_pad = _round_up(inner_dim, 128)
    ncls_pad = _round_up(num_classes, 128)
    block_n = _choose_block_n(input_dim, inner_pad, ncls_pad, wt_dtype.itemsize, block_n)
    if block_n is not None:
        inner_pad = _round_up(inner_dim, block_n)

    w1 = jnp.pad(w_dense, ((0, 0), (0, inner_pad - inner_dim))).astype(wt_dtype)
    w2 = jnp.pad(w_out, ((0, inner_pad - inner_dim), (0, ncls_pad - num_classes))).astype(wt_dtype)
    # Biases stay f32: they are added to the f32 MXU accumulator.
    b1 = jnp.pad(b_dense.astype(jnp.float32), (0, inner_pad - inner_dim)).reshape(1, inner_pad)
    b2 = jnp.pad(b_out.astype(jnp.float32), (0, ncls_pad - num_classes)).reshape(1, ncls_pad)

    return HeadParams(w1, b1, w2, b2, int(input_dim), int(inner_dim), int(num_classes),
                      int(inner_pad), int(ncls_pad), block_n)


# ----------------------------------------------------------------------------- wrapper

def _apply_head_impl(x, p, *, block_m, features_dtype, single_buffer_weights):
    B, input_dim = x.shape
    if input_dim != p.input_dim:
        raise ValueError(f"x has input_dim={input_dim}, params expect {p.input_dim}")
    out_dtype = x.dtype
    feat_dtype = jnp.dtype(features_dtype) if features_dtype is not None else jnp.dtype(out_dtype)
    compute_dtype = p.w1.dtype

    # Batch tile: sublane-aligned per compute dtype; aim for >= 2 grid steps so the
    # "parallel" batch axis can shard across v7x's two TensorCores.
    sub = 8 if jnp.dtype(compute_dtype).itemsize >= 4 else 16
    tm = min(int(block_m), max(sub, _round_up(-(-B // 2), sub)))
    b_pad = _round_up(B, tm)

    x_p = x if x.dtype == compute_dtype else x.astype(compute_dtype)
    if b_pad != B:
        x_p = jnp.pad(x_p, ((0, b_pad - B), (0, 0)))

    pipe = {"pipeline_mode": pl.Buffered(1)} if single_buffer_weights else {}

    cd_size = jnp.dtype(compute_dtype).itemsize
    f_size = jnp.dtype(feat_dtype).itemsize
    o_size = jnp.dtype(out_dtype).itemsize

    flops = 2 * b_pad * input_dim * p.inner_pad + 2 * b_pad * p.inner_pad * p.ncls_pad
    hbm_bytes = (x_p.size * cd_size
                 + p.w1.size * p.w1.dtype.itemsize + p.w2.size * p.w2.dtype.itemsize
                 + p.b1.size * 4 + p.b2.size * 4
                 + b_pad * p.ncls_pad * o_size + b_pad * p.inner_pad * f_size)
    cost = pl.CostEstimate(flops=int(flops), transcendentals=0, bytes_accessed=int(hbm_bytes))

    if p.block_n is None:
        # Resident-weights path: grid over batch only.
        grid = (b_pad // tm,)
        in_specs = [
            pl.BlockSpec((tm, input_dim), lambda i: (i, 0)),
            pl.BlockSpec((input_dim, p.inner_pad), lambda i: (0, 0), **pipe),
            pl.BlockSpec((1, p.inner_pad), lambda i: (0, 0), **pipe),
            pl.BlockSpec((p.inner_pad, p.ncls_pad), lambda i: (0, 0), **pipe),
            pl.BlockSpec((1, p.ncls_pad), lambda i: (0, 0), **pipe),
        ]
        out_specs = (
            pl.BlockSpec((tm, p.ncls_pad), lambda i: (i, 0)),
            pl.BlockSpec((tm, p.inner_pad), lambda i: (i, 0)),
        )
        scratch_shapes = ()
        kernel = _head_kernel_resident
        semantics = ("parallel",)
        w_bufs = 1 if single_buffer_weights else 2
        vmem_need = (w_bufs * (p.w1.size * cd_size + p.w2.size * cd_size
                               + p.b1.size * 4 + p.b2.size * 4)
                     + 2 * tm * (input_dim * cd_size + p.ncls_pad * o_size
                                 + p.inner_pad * f_size))
    else:
        # inner_dim-tiled fallback (large d_model / v7x): logits accumulated in VMEM.
        bn = p.block_n
        grid = (b_pad // tm, p.inner_pad // bn)
        in_specs = [
            pl.BlockSpec((tm, input_dim), lambda i, j: (i, 0)),
            pl.BlockSpec((input_dim, bn), lambda i, j: (0, j)),
            pl.BlockSpec((1, bn), lambda i, j: (0, j)),
            pl.BlockSpec((bn, p.ncls_pad), lambda i, j: (j, 0)),
            pl.BlockSpec((1, p.ncls_pad), lambda i, j: (0, 0), **pipe),
        ]
        out_specs = (
            pl.BlockSpec((tm, p.ncls_pad), lambda i, j: (i, 0)),
            pl.BlockSpec((tm, bn), lambda i, j: (i, j)),
        )
        scratch_shapes = (pltpu.VMEM((tm, p.ncls_pad), jnp.float32),)
        kernel = _head_kernel_inner_tiled
        semantics = ("parallel", "arbitrary")
        vmem_need = (2 * (input_dim * bn * cd_size + bn * 4 + bn * p.ncls_pad * cd_size)
                     + (1 if single_buffer_weights else 2) * p.ncls_pad * 4
                     + 2 * tm * (input_dim * cd_size + p.ncls_pad * o_size + bn * f_size)
                     + tm * p.ncls_pad * 4)

    vmem_limit = int(min(vmem_need * 1.25 + (4 << 20), 128 << 20))

    logits_p, feat_p = pl.pallas_call(
        kernel,
        out_shape=(
            jax.ShapeDtypeStruct((b_pad, p.ncls_pad), out_dtype),
            jax.ShapeDtypeStruct((b_pad, p.inner_pad), feat_dtype),
        ),
        grid=grid,
        in_specs=in_specs,
        out_specs=out_specs,
        scratch_shapes=scratch_shapes,
        compiler_params=pltpu.CompilerParams(
            dimension_semantics=semantics,
            vmem_limit_bytes=vmem_limit,
        ),
        cost_estimate=cost,
    )(x_p, p.w1, p.b1, p.w2, p.b2)

    # Strip batch / lane padding outside the kernel.
    return logits_p[:B, :p.num_classes], feat_p[:B, :p.inner_dim]


def apply_head(x, params, *, block_m=256, features_dtype=None, single_buffer_weights=True):
    """Run the classification head on x using prepared (pre-padded, pre-cast) params."""
    try:
        return _apply_head_impl(x, params, block_m=block_m, features_dtype=features_dtype,
                                single_buffer_weights=single_buffer_weights)
    except Exception:
        if not single_buffer_weights:
            raise
        # Fallback for JAX builds where BlockSpec(pipeline_mode=pl.Buffered(1)) is unsupported.
        return _apply_head_impl(x, params, block_m=block_m, features_dtype=features_dtype,
                                single_buffer_weights=False)


def t5_classification_head(x, w_dense, b_dense, w_out, b_out, *,
                           block_m=256, block_n=None, compute_dtype=jnp.bfloat16,
                           features_dtype=None):
    """One-shot convenience wrapper.  Prefer prepare_head_params + apply_head when the
    same weights are reused across many calls (padding/casting then happens once)."""
    params = prepare_head_params(w_dense, b_dense, w_out, b_out,
                                 compute_dtype=compute_dtype, block_n=block_n)
    return apply_head(x, params, block_m=block_m, features_dtype=features_dtype)


# ----------------------------------------------------------------------------- test

if __name__ == "__main__":
    key = jax.random.PRNGKey(0)
    keys = jax.random.split(key, 10)

    # --- Problem 1: small shapes matching the module (resident-weights path) ---
    batch, input_dim, inner_dim, num_classes = 8, 32, 64, 8
    x = jax.random.normal(keys[0], (batch, input_dim), dtype=jnp.float32)
    w_dense = jax.random.normal(keys[1], (input_dim, inner_dim), dtype=jnp.float32) * 0.05
    b_dense = jax.random.normal(keys[2], (inner_dim,), dtype=jnp.float32) * 0.05
    w_out = jax.random.normal(keys[3], (inner_dim, num_classes), dtype=jnp.float32) * 0.05
    b_out = jax.random.normal(keys[4], (num_classes,), dtype=jnp.float32) * 0.05

    feat_ref = jnp.maximum(x @ w_dense + b_dense, 0.0)
    logits_ref = feat_ref @ w_out + b_out

    # (a) exact-precision path (f32 MXU operands, bit-faithful to the module).
    params_f32 = prepare_head_params(w_dense, b_dense, w_out, b_out, compute_dtype=None)
    logits, feats = apply_head(x, params_f32)
    jax.block_until_ready((logits, feats))
    assert logits.shape == (batch, num_classes)
    assert feats.shape == (batch, inner_dim)
    assert jnp.allclose(feats, feat_ref, atol=1e-5, rtol=1e-5)
    assert jnp.allclose(logits, logits_ref, atol=1e-5, rtol=1e-5)

    # (b) default path: bf16 MXU operands, f32 accumulation (per perf review).
    params_bf16 = prepare_head_params(w_dense, b_dense, w_out, b_out)
    logits_b, feats_b = apply_head(x, params_bf16)
    jax.block_until_ready((logits_b, feats_b))
    assert jnp.allclose(feats_b, feat_ref, atol=3e-2, rtol=3e-2)
    assert jnp.allclose(logits_b, logits_ref, atol=3e-2, rtol=3e-2)

    # --- Problem 2: exercise the inner_dim-tiled (large-d_model / v7x) fallback ---
    batch2, in2, hid2, ncls2 = 16, 128, 256, 8
    x2 = jax.random.normal(keys[5], (batch2, in2), dtype=jnp.float32)
    w_dense2 = jax.random.normal(keys[6], (in2, hid2), dtype=jnp.float32) * 0.05
    b_dense2 = jax.random.normal(keys[7], (hid2,), dtype=jnp.float32) * 0.05
    w_out2 = jax.random.normal(keys[8], (hid2, ncls2), dtype=jnp.float32) * 0.05
    b_out2 = jax.random.normal(keys[9], (ncls2,), dtype=jnp.float32) * 0.05

    feat_ref2 = jnp.maximum(x2 @ w_dense2 + b_dense2, 0.0)
    logits_ref2 = feat_ref2 @ w_out2 + b_out2

    params_tiled = prepare_head_params(w_dense2, b_dense2, w_out2, b_out2,
                                       compute_dtype=None, block_n=128)
    logits2, feats2 = apply_head(x2, params_tiled)
    jax.block_until_ready((logits2, feats2))
    assert logits2.shape == (batch2, ncls2)
    assert feats2.shape == (batch2, hid2)
    assert jnp.allclose(feats2, feat_ref2, atol=1e-4, rtol=1e-4)
    assert jnp.allclose(logits2, logits_ref2, atol=1e-4, rtol=1e-4)

    print("KERNEL_OK")
</pallas_src>

<mosaic_0001>
module attributes {stable_mosaic.version = 11 : i64} {
  func.func @_head_kernel_resident(%arg0: i32, %arg1: memref<8x32xf32, #tpu.memory_space<vmem>>, %arg2: memref<32x128xf32, #tpu.memory_space<vmem>>, %arg3: memref<1x128xf32, #tpu.memory_space<vmem>>, %arg4: memref<128x128xf32, #tpu.memory_space<vmem>>, %arg5: memref<1x128xf32, #tpu.memory_space<vmem>>, %arg6: memref<8x128xf32, #tpu.memory_space<vmem>>, %arg7: memref<8x128xf32, #tpu.memory_space<vmem>>) attributes {dimension_semantics = [#tpu.dimension_semantics<parallel>], iteration_bounds = array<i64: 1>, scalar_prefetch = 0 : i64, scratch_operands = 0 : i64, tpu.core_type = #tpu.core_type<tc>, window_params = [{transform_indices = @transform_0, window_bounds = array<i64: 8, 32>}, {pipeline_mode = #tpu.pipeline_mode<synchronous>, transform_indices = @transform_1, window_bounds = array<i64: 32, 128>}, {pipeline_mode = #tpu.pipeline_mode<synchronous>, transform_indices = @transform_2, window_bounds = array<i64: 1, 128>}, {pipeline_mode = #tpu.pipeline_mode<synchronous>, transform_indices = @transform_3, window_bounds = array<i64: 128, 128>}, {pipeline_mode = #tpu.pipeline_mode<synchronous>, transform_indices = @transform_4, window_bounds = array<i64: 1, 128>}, {transform_indices = @transform_5, window_bounds = array<i64: 8, 128>}, {transform_indices = @transform_6, window_bounds = array<i64: 8, 128>}]} {
    %c0 = arith.constant 0 : index
    %c0_0 = arith.constant 0 : index
    %0 = vector.load %arg1[%c0, %c0_0] : memref<8x32xf32, #tpu.memory_space<vmem>>, vector<8x32xf32>
    %c0_1 = arith.constant 0 : index
    %c0_2 = arith.constant 0 : index
    %1 = vector.load %arg2[%c0_1, %c0_2] : memref<32x128xf32, #tpu.memory_space<vmem>>, vector<32x128xf32>
    %cst = arith.constant dense<0.000000e+00> : vector<8x128xf32>
    %2 = tpu.matmul %0, %1, %cst {dimension_numbers = #tpu.dot_dimension_numbers<[1], [0], [0], [1], [0, 0, 1, 1], [], []>} : vector<8x32xf32>, vector<32x128xf32>, vector<8x128xf32> -> vector<8x128xf32>
    %c0_3 = arith.constant 0 : index
    %c0_4 = arith.constant 0 : index
    %3 = vector.load %arg3[%c0_3, %c0_4] : memref<1x128xf32, #tpu.memory_space<vmem>>, vector<1x128xf32>
    %4 = vector.broadcast %3 : vector<1x128xf32> to vector<8x128xf32>
    %5 = arith.addf %2, %4 : vector<8x128xf32>
    %cst_5 = arith.constant 0.000000e+00 : f32
    %6 = vector.broadcast %cst_5 : f32 to vector<8x128xf32>
    %7 = arith.maximumf %5, %6 : vector<8x128xf32>
    %c0_6 = arith.constant 0 : index
    %c0_7 = arith.constant 0 : index
    %8 = vector.load %arg7[%c0_6, %c0_7] : memref<8x128xf32, #tpu.memory_space<vmem>>, vector<8x128xf32>
    tpu.vector_store %arg7[%c0_6, %c0_7], %7 {strides = array<i32>} : memref<8x128xf32, #tpu.memory_space<vmem>>, vector<8x128xf32>,
    %c0_8 = arith.constant 0 : index
    %c0_9 = arith.constant 0 : index
    %9 = vector.load %arg4[%c0_8, %c0_9] : memref<128x128xf32, #tpu.memory_space<vmem>>, vector<128x128xf32>
    %cst_10 = arith.constant dense<0.000000e+00> : vector<8x128xf32>
    %10 = tpu.matmul %7, %9, %cst_10 {dimension_numbers = #tpu.dot_dimension_numbers<[1], [0], [0], [1], [0, 0, 1, 1], [], []>} : vector<8x128xf32>, vector<128x128xf32>, vector<8x128xf32> -> vector<8x128xf32>
    %c0_11 = arith.constant 0 : index
    %c0_12 = arith.constant 0 : index
    %11 = vector.load %arg5[%c0_11, %c0_12] : memref<1x128xf32, #tpu.memory_space<vmem>>, vector<1x128xf32>
    %12 = vector.broadcast %11 : vector<1x128xf32> to vector<8x128xf32>
    %13 = arith.addf %10, %12 : vector<8x128xf32>
    %c0_13 = arith.constant 0 : index
    %c0_14 = arith.constant 0 : index
    %14 = vector.load %arg6[%c0_13, %c0_14] : memref<8x128xf32, #tpu.memory_space<vmem>>, vector<8x128xf32>
    tpu.vector_store %arg6[%c0_13, %c0_14], %13 {strides = array<i32>} : memref<8x128xf32, #tpu.memory_space<vmem>>, vector<8x128xf32>,
    return
  }
  func.func @transform_0(%arg0: i32) -> (i32, i32) {
    %c0_i32 = arith.constant 0 : i32
    %c0_i32_0 = arith.constant 0 : i32
    return %arg0, %c0_i32 : i32, i32
  }
  func.func @transform_1(%arg0: i32) -> (i32, i32) {
    %c0_i32 = arith.constant 0 : i32
    %c0_i32_0 = arith.constant 0 : i32
    %c0_i32_1 = arith.constant 0 : i32
    return %c0_i32, %c0_i32_0 : i32, i32
  }
  func.func @transform_2(%arg0: i32) -> (i32, i32) {
    %c0_i32 = arith.constant 0 : i32
    %c0_i32_0 = arith.constant 0 : i32
    %c0_i32_1 = arith.constant 0 : i32
    return %c0_i32, %c0_i32_0 : i32, i32
  }
  func.func @transform_3(%arg0: i32) -> (i32, i32) {
    %c0_i32 = arith.constant 0 : i32
    %c0_i32_0 = arith.constant 0 : i32
    %c0_i32_1 = arith.constant 0 : i32
    return %c0_i32, %c0_i32_0 : i32, i32
  }
  func.func @transform_4(%arg0: i32) -> (i32, i32) {
    %c0_i32 = arith.constant 0 : i32
    %c0_i32_0 = arith.constant 0 : i32
    %c0_i32_1 = arith.constant 0 : i32
    return %c0_i32, %c0_i32_0 : i32, i32
  }
  func.func @transform_5(%arg0: i32) -> (i32, i32) {
    %c0_i32 = arith.constant 0 : i32
    %c0_i32_0 = arith.constant 0 : i32
    return %arg0, %c0_i32 : i32, i32
  }
  func.func @transform_6(%arg0: i32) -> (i32, i32) {
    %c0_i32 = arith.constant 0 : i32
    %c0_i32_0 = arith.constant 0 : i32
    return %arg0, %c0_i32 : i32, i32
  }
}

module attributes {stable_mosaic.version = 11 : i64} {
  func.func @_head_kernel_resident(%arg0: i32, %arg1: memref<8x32xf32, #tpu.memory_space<vmem>>, %arg2: memref<32x128xf32, #tpu.memory_space<vmem>>, %arg3: memref<1x128xf32, #tpu.memory_space<vmem>>, %arg4: memref<128x128xf32, #tpu.memory_space<vmem>>, %arg5: memref<1x128xf32, #tpu.memory_space<vmem>>, %arg6: memref<8x128xf32, #tpu.memory_space<vmem>>, %arg7: memref<8x128xf32, #tpu.memory_space<vmem>>) attributes {dimension_semantics = [#tpu.dimension_semantics<parallel>], iteration_bounds = array<i64: 1>, scalar_prefetch = 0 : i64, scratch_operands = 0 : i64, tpu.core_type = #tpu.core_type<tc>, window_params = [{transform_indices = @transform_0, window_bounds = array<i64: 8, 32>}, {pipeline_mode = #tpu.pipeline_mode<synchronous>, transform_indices = @transform_1, window_bounds = array<i64: 32, 128>}, {pipeline_mode = #tpu.pipeline_mode<synchronous>, transform_indices = @transform_2, window_bounds = array<i64: 1, 128>}, {pipeline_mode = #tpu.pipeline_mode<synchronous>, transform_indices = @transform_3, window_bounds = array<i64: 128, 128>}, {pipeline_mode = #tpu.pipeline_mode<synchronous>, transform_indices = @transform_4, window_bounds = array<i64: 1, 128>}, {transform_indices = @transform_5, window_bounds = array<i64: 8, 128>}, {transform_indices = @transform_6, window_bounds = array<i64: 8, 128>}]} {
    %c0 = arith.constant 0 : index
    %c0_0 = arith.constant 0 : index
    %0 = vector.load %arg1[%c0, %c0_0] : memref<8x32xf32, #tpu.memory_space<vmem>>, vector<8x32xf32>
    %c0_1 = arith.constant 0 : index
    %c0_2 = arith.constant 0 : index
    %1 = vector.load %arg2[%c0_1, %c0_2] : memref<32x128xf32, #tpu.memory_space<vmem>>, vector<32x128xf32>
    %cst = arith.constant dense<0.000000e+00> : vector<8x128xf32>
    %2 = tpu.matmul %0, %1, %cst {dimension_numbers = #tpu.dot_dimension_numbers<[1], [0], [0], [1], [0, 0, 1, 1], [], []>} : vector<8x32xf32>, vector<32x128xf32>, vector<8x128xf32> -> vector<8x128xf32>
    %c0_3 = arith.constant 0 : index
    %c0_4 = arith.constant 0 : index
    %3 = vector.load %arg3[%c0_3, %c0_4] : memref<1x128xf32, #tpu.memory_space<vmem>>, vector<1x128xf32>
    %4 = vector.broadcast %3 : vector<1x128xf32> to vector<8x128xf32>
    %5 = arith.addf %2, %4 : vector<8x128xf32>
    %cst_5 = arith.constant 0.000000e+00 : f32
    %6 = vector.broadcast %cst_5 : f32 to vector<8x128xf32>
    %7 = arith.maximumf %5, %6 : vector<8x128xf32>
    %c0_6 = arith.constant 0 : index
    %c0_7 = arith.constant 0 : index
    %8 = vector.load %arg7[%c0_6, %c0_7] : memref<8x128xf32, #tpu.memory_space<vmem>>, vector<8x128xf32>
    tpu.vector_store %arg7[%c0_6, %c0_7], %7 {strides = array<i32>} : memref<8x128xf32, #tpu.memory_space<vmem>>, vector<8x128xf32>,
    %c0_8 = arith.constant 0 : index
    %c0_9 = arith.constant 0 : index
    %9 = vector.load %arg4[%c0_8, %c0_9] : memref<128x128xf32, #tpu.memory_space<vmem>>, vector<128x128xf32>
    %cst_10 = arith.constant dense<0.000000e+00> : vector<8x128xf32>
    %10 = tpu.matmul %7, %9, %cst_10 {dimension_numbers = #tpu.dot_dimension_numbers<[1], [0], [0], [1], [0, 0, 1, 1], [], []>} : vector<8x128xf32>, vector<128x128xf32>, vector<8x128xf32> -> vector<8x128xf32>
    %c0_11 = arith.constant 0 : index
    %c0_12 = arith.constant 0 : index
    %11 = vector.load %arg5[%c0_11, %c0_12] : memref<1x128xf32, #tpu.memory_space<vmem>>, vector<1x128xf32>
    %12 = vector.broadcast %11 : vector<1x128xf32> to vector<8x128xf32>
    %13 = arith.addf %10, %12 : vector<8x128xf32>
    %c0_13 = arith.constant 0 : index
    %c0_14 = arith.constant 0 : index
    %14 = vector.load %arg6[%c0_13, %c0_14] : memref<8x128xf32, #tpu.memory_space<vmem>>, vector<8x128xf32>
    tpu.vector_store %arg6[%c0_13, %c0_14], %13 {strides = array<i32>} : memref<8x128xf32, #tpu.memory_space<vmem>>, vector<8x128xf32>,
    return
  }
  func.func @transform_0(%arg0: i32) -> (i32, i32) {
    %c0_i32 = arith.constant 0 : i32
    %c0_i32_0 = arith.constant 0 : i32
    return %arg0, %c0_i32 : i32, i32
  }
  func.func @transform_1(%arg0: i32) -> (i32, i32) {
    %c0_i32 = arith.constant 0 : i32
    %c0_i32_0 = arith.constant 0 : i32
    %c0_i32_1 = arith.constant 0 : i32
    return %c0_i32, %c0_i32_0 : i32, i32
  }
  func.func @transform_2(%arg0: i32) -> (i32, i32) {
    %c0_i32 = arith.constant 0 : i32
    %c0_i32_0 = arith.constant 0 : i32
    %c0_i32_1 = arith.constant 0 : i32
    return %c0_i32, %c0_i32_0 : i32, i32
  }
  func.func @transform_3(%arg0: i32) -> (i32, i32) {
    %c0_i32 = arith.constant 0 : i32
    %c0_i32_0 = arith.constant 0 : i32
    %c0_i32_1 = arith.constant 0 : i32
    return %c0_i32, %c0_i32_0 : i32, i32
  }
  func.func @transform_4(%arg0: i32) -> (i32, i32) {
    %c0_i32 = arith.constant 0 : i32
    %c0_i32_0 = arith.constant 0 : i32
    %c0_i32_1 = arith.constant 0 : i32
    return %c0_i32, %c0_i32_0 : i32, i32
  }
  func.func @transform_5(%arg0: i32) -> (i32, i32) {
    %c0_i32 = arith.constant 0 : i32
    %c0_i32_0 = arith.constant 0 : i32
    return %arg0, %c0_i32 : i32, i32
  }
  func.func @transform_6(%arg0: i32) -> (i32, i32) {
    %c0_i32 = arith.constant 0 : i32
    %c0_i32_0 = arith.constant 0 : i32
    return %arg0, %c0_i32 : i32, i32
  }
}

</mosaic_0001>

<bundles_post_ra>
// kernel: tpu_custom_call.1
= control target key start
LH: loop header
LB: loop body
LE: loop exit
PB: predicated region body
PF: predicated region fallthrough
CT: control target
= control target key end

     0   :  { %12 = vsyncpa [#allocation3], 0  ;;  %s380_s0 = inlined_call_operand.hbm [shape: f32[8,32], index: 0, kind: input, shape index: {}]   ;;  %s381_s1 = inlined_call_operand.hbm [shape: f32[32,128], index: 1, kind: input, shape index: {}]   ;;  %s382_s2 = inlined_call_operand.vmem [shape: f32[1,128], index: 2, kind: input, shape index: {}]   ;;  %s383_s3 = inlined_call_operand.hbm [shape: f32[128,128], index: 3, kind: input, shape index: {}]   ;;  %s384_s4 = inlined_call_operand.vmem [shape: f32[1,128], index: 4, kind: input, shape index: {}]   ;;  %s385_s5 = inlined_call_operand.hbm [shape: f32[8,128], index: 5, kind: output, shape index: {0}]   ;;  %s386_s6 = inlined_call_operand.hbm [shape: f32[8,128], index: 6, kind: output, shape index: {1}]  }
   0x1   :  { %13 = vsyncpa [#allocation6], 0 }
   0x2   :  { %14 = vsyncpa [#allocation4], 0  ;;  %s31_s23 = sshll.u32 %s381_s1, 4  ;;  %s32_s23 = int_to_ptr.hbm [resolvable:$true] %s31_s23 }
   0x3   :  { %15 = vsyncpa [#allocation10], 0  ;;  %s317_s24 = smov [#allocation5]   ;;  %s21_s28 = sshll.u32 %s380_s0, 4  ;;  %s22_s28 = int_to_ptr.hbm [resolvable:$true] %s21_s28 }
   0x4   :  { %s33_s25 = sshll.u32 %s317_s24, 4  ;;  %s318_s29 = smov 128   ;;  %s34_s25 = int_to_ptr.vmem [resolvable:$true] %s33_s25 }
   0x5   :  { %s319_s30 = smov 8   ;;  %s320_s7 = smov [#allocation2]  }
   0x6   :  { %39 = dma.hbm_to_vmem [thread:$0]  %s32_s23, 512, %s34_s25, [#allocation6], %s318_s29, %s318_s29, %s319_s30  }
   0x7   :  { %s23_s8 = sshll.u32 %s320_s7, 4  ;;  %s46_s11 = sshll.u32 %s383_s3, 4  ;;  %s24_s8 = int_to_ptr.vmem [resolvable:$true] %s23_s8  ;;  %s47_s11 = int_to_ptr.hbm [resolvable:$true] %s46_s11 }
   0x8   :  { %26 = dma.hbm_to_vmem [thread:$0]  %s22_s28, 128, %s24_s8, [#allocation3]  }
   0x9   :  { %s321_s1 = smov [#allocation7]  }
   0xa   :  { %s48_s12 = sshll.u32 %s321_s1, 4  ;;  %s49_s12 = int_to_ptr.vmem [resolvable:$true] %s48_s12 }
   0xb   :  { %54 = dma.hbm_to_vmem [thread:$0]  %s47_s11, 2048, %s49_s12, [#allocation6], %s318_s29, %s318_s29, %s319_s30  }
   0xc   :  { %309 = dma.done.wait [#allocation3], 128  }
   0xd   :  { %310 = vsyncadd [#allocation3], 4294967168 }
   0xe   :  { %311 = dma.done.wait [#allocation6], 2560  }
   0xf   :  { %312 = vsyncadd [#allocation6], 4294964736  ;;  %v73_v0 = vld [vmem:[#allocation5 + $0x18] sm:$0xff]  ;;  %v72_v1 = vld [vmem:[#allocation5 + $0x10] sm:$0xff]  ;;  %vm78_vm0 = vcmask 261120   ;;  %s322_s13 = smov [#allocation9]  }
  0x10   :  { %94 = vmatpush.msra.mxu0 %v73_v0  ;;  %v119_v2 = vld [vmem:[#allocation7 + $0x78] sm:$0xff]  ;;  %v71_v3 = vld [vmem:[#allocation5 + $0x8] sm:$0xff]  ;;  %v118_v4 = vld [vmem:[#allocation7 + $0x70] sm:$0xff]  ;;  %s161_s14 = sshll.u32 %s322_s13, 4  ;;  %s163_s17 = sshll.u32 %s386_s6, 4  ;;  %s162_s14 = int_to_ptr.vmem [resolvable:$true] %s161_s14  ;;  %s164_s17 = int_to_ptr.hbm [resolvable:$true] %s163_s17 }
  0x11   :  { %124 = vmatpush.msra.mxu1 %v119_v2  ;;  %v117_v5 = vld [vmem:[#allocation7 + $0x68] sm:$0xff]  ;;  %v70_v6 = vld [vmem:[#allocation5] sm:$0xff]  ;;  %v69_v7 = vld [vmem:[#allocation2] sm:$0xff]  ;;  %s323_s20 = smov [#allocation8]   ;;  %s152_s23 = sshll.u32 %s385_s5, 4  ;;  %s153_s23 = int_to_ptr.hbm [resolvable:$true] %s152_s23 }
  0x12   :  { %95 = vmatpush.msra.mxu0 %v72_v1  ;;  %v116_v8 = vld [vmem:[#allocation7 + $0x60] sm:$0xff]  ;;  %v115_v9 = vld [vmem:[#allocation7 + $0x58] sm:$0xff]  ;;  %v114_v10 = vld [vmem:[#allocation7 + $0x50] sm:$0xff] }
  0x13   :  { %125 = vmatpush.msra.mxu1 %v118_v4  ;;  %v113_v11 = vld [vmem:[#allocation7 + $0x48] sm:$0xff]  ;;  %v112_v12 = vld [vmem:[#allocation7 + $0x40] sm:$0xff]  ;;  %v111_v13 = vld [vmem:[#allocation7 + $0x38] sm:$0xff] }
  0x14   :  { %96 = vmatpush.msra.mxu0 %v71_v3  ;;  %v110_v14 = vld [vmem:[#allocation7 + $0x30] sm:$0xff]  ;;  %v109_v15 = vld [vmem:[#allocation7 + $0x28] sm:$0xff]  ;;  %v108_v16 = vld [vmem:[#allocation7 + $0x20] sm:$0xff] }
  0x15   :  { %126 = vmatpush.msra.mxu1 %v117_v5  ;;  %v107_v17 = vld [vmem:[#allocation7 + $0x18] sm:$0xff]  ;;  %v106_v18 = vld [vmem:[#allocation7 + $0x10] sm:$0xff]  ;;  %v105_v19 = vld [vmem:[#allocation7 + $0x8] sm:$0xff] }
  0x16   :  { %97 = vmatpush.msra.mxu0 %v70_v6  ;;  %v104_v20 = vld [vmem:[#allocation7] sm:$0xff]  ;;  %v187_v21 = vld [vmem:[%s382_s2] ss:$0 sm:$0xff]  ;;  %s150_s2 = sshll.u32 %s323_s20, 4  ;;  %s151_s2 = int_to_ptr.vmem [resolvable:$true] %s150_s2 }
  0x17   :  { %179 = vmatmul.msk.f32.vlgmr.msra.gmra.mxu0 %vm78_vm0, %v69_v7  ;;  %127 = vmatpush.msra.mxu1 %v116_v8  ;;  %v188_v25 = vld [vmem:[%s384_s4] ss:$0 sm:$0xff] }
  0x19   :  { %128 = vmatpush.msra.mxu1 %v115_v9 }
  0x1b   :  { %129 = vmatpush.msra.mxu1 %v114_v10 }
  0x1d   :  { %130 = vmatpush.msra.mxu1 %v113_v11 }
  0x1f   :  { %131 = vmatpush.msra.mxu1 %v112_v12 }
  0x21   :  { %132 = vmatpush.msra.mxu1 %v111_v13 }
  0x23   :  { %133 = vmatpush.msra.mxu1 %v110_v14 }
  0x25   :  { %134 = vmatpush.msra.mxu1 %v109_v15 }
  0x27   :  { %135 = vmatpush.msra.mxu1 %v108_v16 }
  0x29   :  { %136 = vmatpush.msra.mxu1 %v107_v17 }
  0x2b   :  { %137 = vmatpush.msra.mxu1 %v106_v18 }
  0x2d   :  { %138 = vmatpush.msra.mxu1 %v105_v19 }
  0x2f   :  { %139 = vmatpush.msra.mxu1 %v104_v20 }
  0x94   :  { %v99_v22 = vpop.f32.mrf.mxu0 }
  0x95   :  { %v100_v23 = vadd.f32 %v187_v21, %v99_v22 }
  0x97   :  { %v102_v24 = vmax.f32 %v100_v23, 0.0 }
  0x99   :  { %103 = vst [vmem:[#allocation9] sm:$0xff] %v102_v24  ;;  %140 = vmatmul.f32.vlgmr.msra.gmra.mxu1 %v102_v24 }
  0x9a   :  { %166 = dma.vmem_to_hbm [thread:$0]  %s162_s14, 128, %s164_s17, [#allocation10]  }
 0x116   :  { %v141_v26 = vpop.f32.mrf.mxu1 }
 0x117   :  { %v142_v27 = vadd.f32 %v188_v25, %v141_v26 }
 0x119   :  { %144 = vst [vmem:[#allocation8] sm:$0xff] %v142_v27 }
 0x11a   :  { %155 = dma.vmem_to_hbm [thread:$0]  %s151_s2, 128, %s153_s23, [#allocation4]  }
 0x11b   :  { %313 = dma.done.wait [#allocation4], 128  }
 0x11c   :  { %314 = vsyncadd [#allocation4], 4294967168 }
 0x11d   :  { %315 = dma.done.wait [#allocation10], 128  }
 0x11e   :  { %316 = vsyncadd [#allocation10], 4294967168 }
 0x11f   :  { %175 = vsyncpa [#allocation3], 1 }
 0x120   :  { %176 = vsyncpa [#allocation6], 1 }
 0x121   :  { %177 = vsyncpa [#allocation4], 1 }
 0x122   :  { %178 = vsyncpa [#allocation10], 1 }

// kernel: tpu_custom_call.1
= control target key start
LH: loop header
LB: loop body
LE: loop exit
PB: predicated region body
PF: predicated region fallthrough
CT: control target
= control target key end

     0   :  { %12 = vsyncpa [#allocation3], 0  ;;  %s380_s0 = inlined_call_operand.hbm [shape: f32[8,32], index: 0, kind: input, shape index: {}]   ;;  %s381_s1 = inlined_call_operand.hbm [shape: f32[32,128], index: 1, kind: input, shape index: {}]   ;;  %s382_s2 = inlined_call_operand.vmem [shape: f32[1,128], index: 2, kind: input, shape index: {}]   ;;  %s383_s3 = inlined_call_operand.hbm [shape: f32[128,128], index: 3, kind: input, shape index: {}]   ;;  %s384_s4 = inlined_call_operand.vmem [shape: f32[1,128], index: 4, kind: input, shape index: {}]   ;;  %s385_s5 = inlined_call_operand.hbm [shape: f32[8,128], index: 5, kind: output, shape index: {0}]   ;;  %s386_s6 = inlined_call_operand.hbm [shape: f32[8,128], index: 6, kind: output, shape index: {1}]  }
   0x1   :  { %13 = vsyncpa [#allocation6], 0 }
   0x2   :  { %14 = vsyncpa [#allocation4], 0  ;;  %s31_s23 = sshll.u32 %s381_s1, 4  ;;  %s32_s23 = int_to_ptr.hbm [resolvable:$true] %s31_s23 }
   0x3   :  { %15 = vsyncpa [#allocation10], 0  ;;  %s317_s24 = smov [#allocation5]   ;;  %s21_s28 = sshll.u32 %s380_s0, 4  ;;  %s22_s28 = int_to_ptr.hbm [resolvable:$true] %s21_s28 }
   0x4   :  { %s33_s25 = sshll.u32 %s317_s24, 4  ;;  %s318_s29 = smov 128   ;;  %s34_s25 = int_to_ptr.vmem [resolvable:$true] %s33_s25 }
   0x5   :  { %s319_s30 = smov 8   ;;  %s320_s7 = smov [#allocation2]  }
   0x6   :  { %39 = dma.hbm_to_vmem [thread:$0]  %s32_s23, 512, %s34_s25, [#allocation6], %s318_s29, %s318_s29, %s319_s30  }
   0x7   :  { %s23_s8 = sshll.u32 %s320_s7, 4  ;;  %s46_s11 = sshll.u32 %s383_s3, 4  ;;  %s24_s8 = int_to_ptr.vmem [resolvable:$true] %s23_s8  ;;  %s47_s11 = int_to_ptr.hbm [resolvable:$true] %s46_s11 }
   0x8   :  { %26 = dma.hbm_to_vmem [thread:$0]  %s22_s28, 128, %s24_s8, [#allocation3]  }
   0x9   :  { %s321_s1 = smov [#allocation7]  }
   0xa   :  { %s48_s12 = sshll.u32 %s321_s1, 4  ;;  %s49_s12 = int_to_ptr.vmem [resolvable:$true] %s48_s12 }
   0xb   :  { %54 = dma.hbm_to_vmem [thread:$0]  %s47_s11, 2048, %s49_s12, [#allocation6], %s318_s29, %s318_s29, %s319_s30  }
   0xc   :  { %309 = dma.done.wait [#allocation3], 128  }
   0xd   :  { %310 = vsyncadd [#allocation3], 4294967168 }
   0xe   :  { %311 = dma.done.wait [#allocation6], 2560  }
   0xf   :  { %312 = vsyncadd [#allocation6], 4294964736  ;;  %v73_v0 = vld [vmem:[#allocation5 + $0x18] sm:$0xff]  ;;  %v72_v1 = vld [vmem:[#allocation5 + $0x10] sm:$0xff]  ;;  %vm78_vm0 = vcmask 261120   ;;  %s322_s13 = smov [#allocation9]  }
  0x10   :  { %94 = vmatpush.msra.mxu0 %v73_v0  ;;  %v119_v2 = vld [vmem:[#allocation7 + $0x78] sm:$0xff]  ;;  %v71_v3 = vld [vmem:[#allocation5 + $0x8] sm:$0xff]  ;;  %v118_v4 = vld [vmem:[#allocation7 + $0x70] sm:$0xff]  ;;  %s161_s14 = sshll.u32 %s322_s13, 4  ;;  %s163_s17 = sshll.u32 %s386_s6, 4  ;;  %s162_s14 = int_to_ptr.vmem [resolvable:$true] %s161_s14  ;;  %s164_s17 = int_to_ptr.hbm [resolvable:$true] %s163_s17 }
  0x11   :  { %124 = vmatpush.msra.mxu1 %v119_v2  ;;  %v117_v5 = vld [vmem:[#allocation7 + $0x68] sm:$0xff]  ;;  %v70_v6 = vld [vmem:[#allocation5] sm:$0xff]  ;;  %v69_v7 = vld [vmem:[#allocation2] sm:$0xff]  ;;  %s323_s20 = smov [#allocation8]   ;;  %s152_s23 = sshll.u32 %s385_s5, 4  ;;  %s153_s23 = int_to_ptr.hbm [resolvable:$true] %s152_s23 }
  0x12   :  { %95 = vmatpush.msra.mxu0 %v72_v1  ;;  %v116_v8 = vld [vmem:[#allocation7 + $0x60] sm:$0xff]  ;;  %v115_v9 = vld [vmem:[#allocation7 + $0x58] sm:$0xff]  ;;  %v114_v10 = vld [vmem:[#allocation7 + $0x50] sm:$0xff] }
  0x13   :  { %125 = vmatpush.msra.mxu1 %v118_v4  ;;  %v113_v11 = vld [vmem:[#allocation7 + $0x48] sm:$0xff]  ;;  %v112_v12 = vld [vmem:[#allocation7 + $0x40] sm:$0xff]  ;;  %v111_v13 = vld [vmem:[#allocation7 + $0x38] sm:$0xff] }
  0x14   :  { %96 = vmatpush.msra.mxu0 %v71_v3  ;;  %v110_v14 = vld [vmem:[#allocation7 + $0x30] sm:$0xff]  ;;  %v109_v15 = vld [vmem:[#allocation7 + $0x28] sm:$0xff]  ;;  %v108_v16 = vld [vmem:[#allocation7 + $0x20] sm:$0xff] }
  0x15   :  { %126 = vmatpush.msra.mxu1 %v117_v5  ;;  %v107_v17 = vld [vmem:[#allocation7 + $0x18] sm:$0xff]  ;;  %v106_v18 = vld [vmem:[#allocation7 + $0x10] sm:$0xff]  ;;  %v105_v19 = vld [vmem:[#allocation7 + $0x8] sm:$0xff] }
  0x16   :  { %97 = vmatpush.msra.mxu0 %v70_v6  ;;  %v104_v20 = vld [vmem:[#allocation7] sm:$0xff]  ;;  %v187_v21 = vld [vmem:[%s382_s2] ss:$0 sm:$0xff]  ;;  %s150_s2 = sshll.u32 %s323_s20, 4  ;;  %s151_s2 = int_to_ptr.vmem [resolvable:$true] %s150_s2 }
  0x17   :  { %179 = vmatmul.msk.f32.vlgmr.msra.gmra.mxu0 %vm78_vm0, %v69_v7  ;;  %127 = vmatpush.msra.mxu1 %v116_v8  ;;  %v188_v25 = vld [vmem:[%s384_s4] ss:$0 sm:$0xff] }
  0x19   :  { %128 = vmatpush.msra.mxu1 %v115_v9 }
  0x1b   :  { %129 = vmatpush.msra.mxu1 %v114_v10 }
  0x1d   :  { %130 = vmatpush.msra.mxu1 %v113_v11 }
  0x1f   :  { %131 = vmatpush.msra.mxu1 %v112_v12 }
  0x21   :  { %132 = vmatpush.msra.mxu1 %v111_v13 }
  0x23   :  { %133 = vmatpush.msra.mxu1 %v110_v14 }
  0x25   :  { %134 = vmatpush.msra.mxu1 %v109_v15 }
  0x27   :  { %135 = vmatpush.msra.mxu1 %v108_v16 }
  0x29   :  { %136 = vmatpush.msra.mxu1 %v107_v17 }
  0x2b   :  { %137 = vmatpush.msra.mxu1 %v106_v18 }
  0x2d   :  { %138 = vmatpush.msra.mxu1 %v105_v19 }
  0x2f   :  { %139 = vmatpush.msra.mxu1 %v104_v20 }
  0x94   :  { %v99_v22 = vpop.f32.mrf.mxu0 }
  0x95   :  { %v100_v23 = vadd.f32 %v187_v21, %v99_v22 }
  0x97   :  { %v102_v24 = vmax.f32 %v100_v23, 0.0 }
  0x99   :  { %103 = vst [vmem:[#allocation9] sm:$0xff] %v102_v24  ;;  %140 = vmatmul.f32.vlgmr.msra.gmra.mxu1 %v102_v24 }
  0x9a   :  { %166 = dma.vmem_to_hbm [thread:$0]  %s162_s14, 128, %s164_s17, [#allocation10]  }
 0x116   :  { %v141_v26 = vpop.f32.mrf.mxu1 }
 0x117   :  { %v142_v27 = vadd.f32 %v188_v25, %v141_v26 }
 0x119   :  { %144 = vst [vmem:[#allocation8] sm:$0xff] %v142_v27 }
 0x11a   :  { %155 = dma.vmem_to_hbm [thread:$0]  %s151_s2, 128, %s153_s23, [#allocation4]  }
 0x11b   :  { %313 = dma.done.wait [#allocation4], 128  }
 0x11c   :  { %314 = vsyncadd [#allocation4], 4294967168 }
 0x11d   :  { %315 = dma.done.wait [#allocation10], 128  }
 0x11e   :  { %316 = vsyncadd [#allocation10], 4294967168 }
 0x11f   :  { %175 = vsyncpa [#allocation3], 1 }
 0x120   :  { %176 = vsyncpa [#allocation6], 1 }
 0x121   :  { %177 = vsyncpa [#allocation4], 1 }
 0x122   :  { %178 = vsyncpa [#allocation10], 1 }

</bundles_post_ra>
